<compile_context>
chip_gen: v7x
topology: tpu7x:2x2x1
jax: 0.10.0
libtpu: 0.0.40
codegen_flags: <defaults>
</compile_context>

<pallas_src>
import jax
import jax.numpy as jnp
from jax.experimental import pallas as pl
from jax.experimental.pallas import tpu as pltpu


def _round_up(a, b):
    return (a + b - 1) // b * b


def _divisor_tile(n_pad, cap):
    """Largest multiple of 128 that divides n_pad and is <= cap."""
    cap = min(cap, n_pad)
    t = (cap // 128) * 128
    while t > 128 and n_pad % t != 0:
        t -= 128
    return max(t, 128)


def _choose_tiles(n):
    n_pad = _round_up(max(n, 1), 128)
    tk = _divisor_tile(n_pad, 2048)        # adjacency reduction (lane) tile
    tm = _divisor_tile(n_pad, 512)         # row (sublane) tile
    if n_pad // tm < 2 and n_pad >= 256:   # >=2 row blocks -> both v7x TCs get work
        tm = _divisor_tile(n_pad, n_pad // 2)
    return n_pad, tm, tk


def _vmem_limit_bytes(tm, tk):
    """Explicit accounting (lane-padded to 128, double-buffered inputs/outputs)."""
    lane = 128
    adj = 2 * tm * tk * 1            # int8 adjacency tiles
    h1_nbr = 2 * tk * lane * 2       # bf16 (tk,16) padded to lane width
    h1_root = 2 * tm * lane * 2
    inv_deg = 2 * tm * lane * 4
    out = 2 * tm * lane * 4
    acc = tm * lane * 4
    weights = 1 << 20                # resident weight/bias blocks + slack
    total = adj + h1_nbr + h1_root + inv_deg + out + acc + weights
    # 2x margin for Mosaic internal scratch; stays well under v7x's 64 MiB/TC.
    return min(max(2 * total, 16 << 20), 64 << 20)


# ----------------------------- lin1 + ReLU pass ------------------------------

def lin1_relu_kernel(x_ref, w1_ref, b1_ref, h1_ref):
    h = jnp.dot(x_ref[...], w1_ref[...], preferred_element_type=jnp.float32)
    h1_ref[...] = jnp.maximum(h + b1_ref[...], 0.0).astype(h1_ref.dtype)


def lin1_relu(x_bf, w1t_bf, b1_f32, tm):
    n_pad = x_bf.shape[0]
    return pl.pallas_call(
        lin1_relu_kernel,
        out_shape=jax.ShapeDtypeStruct((n_pad, 16), jnp.bfloat16),
        grid_spec=pltpu.PrefetchScalarGridSpec(
            num_scalar_prefetch=0,
            grid=(n_pad // tm,),
            in_specs=[
                pl.BlockSpec((tm, 16), lambda i: (i, 0)),
                pl.BlockSpec((16, 16), lambda i: (0, 0)),
                pl.BlockSpec((1, 16), lambda i: (0, 0)),
            ],
            out_specs=pl.BlockSpec((tm, 16), lambda i: (i, 0)),
        ),
        compiler_params=pltpu.CompilerParams(
            dimension_semantics=("parallel",),
        ),
    )(x_bf, w1t_bf, b1_f32)


# ------------------------- SAGEConv(mean) + lin2 pass ------------------------

def net2_kernel(h1_nbr_ref, h1_root_ref, adj_ref, invdeg_ref,
                wl_ref, wr_ref, bsage_ref, w2_ref, b2_ref,
                o_ref,
                acc_ref):
    k = pl.program_id(1)

    @pl.when(k == 0)
    def _():
        acc_ref[...] = jnp.zeros_like(acc_ref)

    # int8 adjacency tile -> bf16 (cheap VPU cast; v7x MXU has no int8 path),
    # then a single MXU dot per (i, k) step: acc[i] += A[i, k] @ h1[k].
    a = adj_ref[...].astype(jnp.bfloat16)
    acc_ref[...] += jnp.dot(a, h1_nbr_ref[...], preferred_element_type=jnp.float32)

    @pl.when(k == pl.num_programs(1) - 1)
    def _():
        # Mean aggregation with exact precomputed 1/deg (f32).
        agg = (acc_ref[...] * invdeg_ref[...]).astype(jnp.bfloat16)

        # SAGEConv: lin_l(agg) + lin_r(h1_root) + bias  (two K=16 dots, no concat).
        h2 = (jnp.dot(agg, wl_ref[...], preferred_element_type=jnp.float32)
              + jnp.dot(h1_root_ref[...], wr_ref[...],
                        preferred_element_type=jnp.float32)
              + bsage_ref[...])
        h2 = jnp.maximum(h2, 0.0)

        # lin2
        o_ref[...] = (jnp.dot(h2.astype(jnp.bfloat16), w2_ref[...],
                              preferred_element_type=jnp.float32)
                      + b2_ref[...])


def net2_forward(x, edge_index, params):
    n = x.shape[0]
    n_pad, tm, tk = _choose_tiles(n)

    # ---- wrapper-side glue (O(N*16) + O(E) + one O(N^2) int8 scatter build) ----
    x_pad = jnp.zeros((n_pad, 16), jnp.float32).at[:n, :].set(x).astype(jnp.bfloat16)
    src, dst = edge_index[0], edge_index[1]
    # Adjacency built directly in its storage dtype (int8: exact for multiplicity<=127).
    adj = jnp.zeros((n_pad, n_pad), jnp.int8).at[dst, src].add(jnp.int8(1))
    # In-degree from the edge list (O(E)); exact 1/deg, clamped for isolated nodes.
    deg = jnp.zeros((n_pad,), jnp.float32).at[dst].add(1.0)
    inv_deg = (1.0 / jnp.maximum(deg, 1.0))[:, None]                 # (n_pad, 1) f32

    # Weights: bf16 MXU operands, f32 biases added post-dot.
    w1t = params["lin1_w"].T.astype(jnp.bfloat16)                    # (16, 16)
    b1 = params["lin1_b"][None, :].astype(jnp.float32)               # (1, 16)
    wl = params["sage_lin_l_w"].T.astype(jnp.bfloat16)               # (16, 32)
    wr = params["sage_lin_r_w"].T.astype(jnp.bfloat16)               # (16, 32)
    bsage = params["sage_lin_l_b"][None, :].astype(jnp.float32)      # (1, 32)
    w2t = params["lin2_w"].T.astype(jnp.bfloat16)                    # (32, 32)
    b2 = params["lin2_b"][None, :].astype(jnp.float32)               # (1, 32)

    # h1 = ReLU(lin1(x)) computed once (tiny Pallas pass), reused for all k tiles.
    h1 = lin1_relu(x_pad, w1t, b1, tm)                               # (n_pad, 16) bf16

    grid = (n_pad // tm, n_pad // tk)
    full = lambda shape: pl.BlockSpec(shape, lambda i, k: (0, 0))

    out = pl.pallas_call(
        net2_kernel,
        out_shape=jax.ShapeDtypeStruct((n_pad, 32), jnp.float32),
        grid_spec=pltpu.PrefetchScalarGridSpec(
            num_scalar_prefetch=0,
            grid=grid,
            in_specs=[
                pl.BlockSpec((tk, 16), lambda i, k: (k, 0)),   # h1, neighbor tile
                pl.BlockSpec((tm, 16), lambda i, k: (i, 0)),   # h1, root tile
                pl.BlockSpec((tm, tk), lambda i, k: (i, k)),   # adjacency (int8)
                pl.BlockSpec((tm, 1), lambda i, k: (i, 0)),    # exact 1/deg
                full((16, 32)),                                # Wl^T
                full((16, 32)),                                # Wr^T
                full((1, 32)),                                 # b_sage
                full((32, 32)),                                # W2^T
                full((1, 32)),                                 # b2
            ],
            out_specs=pl.BlockSpec((tm, 32), lambda i, k: (i, 0)),
            scratch_shapes=[pltpu.VMEM((tm, 16), jnp.float32)],
        ),
        compiler_params=pltpu.CompilerParams(
            dimension_semantics=("parallel", "arbitrary"),
            vmem_limit_bytes=_vmem_limit_bytes(tm, tk),
        ),
    )(h1, h1, adj, inv_deg, wl, wr, bsage, w2t, b2)

    return out[:n]


def net2_reference(x, edge_index, params):
    """Pure-JAX f32 reference matching the PyTorch Net2 forward."""
    n = x.shape[0]
    h1 = jnp.maximum(x @ params["lin1_w"].T + params["lin1_b"], 0.0)
    src, dst = edge_index[0], edge_index[1]
    adj = jnp.zeros((n, n), jnp.float32).at[dst, src].add(1.0)
    deg = jnp.maximum(adj.sum(axis=1, keepdims=True), 1.0)
    agg = (adj @ h1) / deg
    h2 = jnp.maximum(agg @ params["sage_lin_l_w"].T + params["sage_lin_l_b"]
                     + h1 @ params["sage_lin_r_w"].T, 0.0)
    return h2 @ params["lin2_w"].T + params["lin2_b"]


def init_params(key):
    ks = jax.random.split(key, 7)

    def u(k, shape, fan_in):
        bound = 1.0 / jnp.sqrt(fan_in)
        return jax.random.uniform(k, shape, jnp.float32, -bound, bound)

    return {
        "lin1_w": u(ks[0], (16, 16), 16),          # Linear(16, 16)
        "lin1_b": u(ks[1], (16,), 16),
        "sage_lin_l_w": u(ks[2], (32, 16), 16),    # SAGEConv neighbor transform
        "sage_lin_l_b": u(ks[3], (32,), 16),
        "sage_lin_r_w": u(ks[4], (32, 16), 16),    # SAGEConv root transform (no bias)
        "lin2_w": u(ks[5], (32, 32), 32),          # Linear(32, 32)
        "lin2_b": u(ks[6], (32,), 32),
    }


if __name__ == "__main__":
    key = jax.random.PRNGKey(0)
    k_param, k_x, k_e = jax.random.split(key, 3)

    params = init_params(k_param)

    N, E = 8, 16
    x = jax.random.normal(k_x, (N, 16), jnp.float32)
    edge_index = jax.random.randint(k_e, (2, E), 0, N, jnp.int32)

    out = net2_forward(x, edge_index, params)
    out = jax.block_until_ready(out)
    assert out.shape == (N, 32) and out.dtype == jnp.float32

    ref = net2_reference(x, edge_index, params)
    err = float(jnp.max(jnp.abs(out - ref)))
    assert err < 1e-1, f"max abs error vs reference too large: {err}"

    print("KERNEL_OK")
</pallas_src>

<mosaic_0001>
module attributes {stable_mosaic.version = 11 : i64} {
  func.func @lin1_relu_kernel(%arg0: i32, %arg1: memref<128x16xbf16, #tpu.memory_space<vmem>>, %arg2: memref<16x16xbf16, #tpu.memory_space<vmem>>, %arg3: memref<1x16xf32, #tpu.memory_space<vmem>>, %arg4: memref<128x16xbf16, #tpu.memory_space<vmem>>) attributes {dimension_semantics = [#tpu.dimension_semantics<parallel>], iteration_bounds = array<i64: 1>, scalar_prefetch = 0 : i64, scratch_operands = 0 : i64, tpu.core_type = #tpu.core_type<tc>, window_params = [{transform_indices = @transform_0, window_bounds = array<i64: 128, 16>}, {pipeline_mode = #tpu.pipeline_mode<synchronous>, transform_indices = @transform_1, window_bounds = array<i64: 16, 16>}, {pipeline_mode = #tpu.pipeline_mode<synchronous>, transform_indices = @transform_2, window_bounds = array<i64: 1, 16>}, {transform_indices = @transform_3, window_bounds = array<i64: 128, 16>}]} {
    %c0 = arith.constant 0 : index
    %c0_0 = arith.constant 0 : index
    %0 = vector.load %arg1[%c0, %c0_0] : memref<128x16xbf16, #tpu.memory_space<vmem>>, vector<128x16xbf16>
    %c0_1 = arith.constant 0 : index
    %c0_2 = arith.constant 0 : index
    %1 = vector.load %arg2[%c0_1, %c0_2] : memref<16x16xbf16, #tpu.memory_space<vmem>>, vector<16x16xbf16>
    %cst = arith.constant dense<0.000000e+00> : vector<128x16xf32>
    %2 = tpu.matmul %0, %1, %cst {dimension_numbers = #tpu.dot_dimension_numbers<[1], [0], [0], [1], [0, 0, 1, 1], [], []>} : vector<128x16xbf16>, vector<16x16xbf16>, vector<128x16xf32> -> vector<128x16xf32>
    %c0_3 = arith.constant 0 : index
    %c0_4 = arith.constant 0 : index
    %3 = vector.load %arg3[%c0_3, %c0_4] : memref<1x16xf32, #tpu.memory_space<vmem>>, vector<1x16xf32>
    %4 = vector.broadcast %3 : vector<1x16xf32> to vector<128x16xf32>
    %5 = arith.addf %2, %4 : vector<128x16xf32>
    %cst_5 = arith.constant 0.000000e+00 : f32
    %6 = vector.broadcast %cst_5 : f32 to vector<128x16xf32>
    %7 = arith.maximumf %5, %6 : vector<128x16xf32>
    %8 = arith.truncf %7 : vector<128x16xf32> to vector<128x16xbf16>
    %c0_6 = arith.constant 0 : index
    %c0_7 = arith.constant 0 : index
    %9 = vector.load %arg4[%c0_6, %c0_7] : memref<128x16xbf16, #tpu.memory_space<vmem>>, vector<128x16xbf16>
    tpu.vector_store %arg4[%c0_6, %c0_7], %8 {strides = array<i32>} : memref<128x16xbf16, #tpu.memory_space<vmem>>, vector<128x16xbf16>,
    return
  }
  func.func @transform_0(%arg0: i32) -> (i32, i32) {
    %c0_i32 = arith.constant 0 : i32
    %c0_i32_0 = arith.constant 0 : i32
    return %arg0, %c0_i32 : i32, i32
  }
  func.func @transform_1(%arg0: i32) -> (i32, i32) {
    %c0_i32 = arith.constant 0 : i32
    %c0_i32_0 = arith.constant 0 : i32
    %c0_i32_1 = arith.constant 0 : i32
    return %c0_i32, %c0_i32_0 : i32, i32
  }
  func.func @transform_2(%arg0: i32) -> (i32, i32) {
    %c0_i32 = arith.constant 0 : i32
    %c0_i32_0 = arith.constant 0 : i32
    %c0_i32_1 = arith.constant 0 : i32
    return %c0_i32, %c0_i32_0 : i32, i32
  }
  func.func @transform_3(%arg0: i32) -> (i32, i32) {
    %c0_i32 = arith.constant 0 : i32
    %c0_i32_0 = arith.constant 0 : i32
    return %arg0, %c0_i32 : i32, i32
  }
}

</mosaic_0001>

<bundles_post_ra>
// kernel: tpu_custom_call.1
= control target key start
LH: loop header
LB: loop body
LE: loop exit
PB: predicated region body
PF: predicated region fallthrough
CT: control target
= control target key end

     0   :  { %vm86_vm0 = vcmask 130048   ;;  %vm288_vm1 = vcmask 125952   ;;  %s519_s1 = inlined_call_operand.vmem [shape: bf16[16,16], index: 1, kind: input, shape index: {}]   ;;  %s520_s0 = inlined_call_operand.vmem [shape: bf16[128,16], index: 0, kind: input, shape index: {}]   ;;  %s521_s2 = inlined_call_operand.vmem [shape: f32[1,16], index: 2, kind: input, shape index: {}]   ;;  %s522_s3 = inlined_call_operand.vmem [shape: bf16[128,16], index: 3, kind: output, shape index: {}]  }
   0x1   :  { %v388_v0 = vld [vmem:[%s519_s1] sm:$0xff]   ;;  %v391_v3 = vld [vmem:[%s520_s0 + $0x8] sm:$0xff]   ;;  %v393_v5 = vld [vmem:[%s520_s0 + $0x10] sm:$0xff]  }
   0x2   :  { %v389_v1 = vld [vmem:[%s520_s0] sm:$0xff]   ;;  %368 = vmatprep.subr.bf16.mxu0 %v388_v0  ;;  %386 = vmatprep.subr.bf16.mxu1 %v388_v0  ;;  %v392_v4 = vld [vmem:[%s520_s0 + $0x28] sm:$0xff]   ;;  %v394_v6 = vld [vmem:[%s520_s0 + $0x30] sm:$0xff]  }
   0x3   :  { %v390_v2 = vld [vmem:[%s520_s0 + $0x20] sm:$0xff]   ;;  %369 = vmatpush3.bf16.msra.mxu0 %v388_v0  ;;  %387 = vmatpush3.bf16.msra.mxu1 %v388_v0  ;;  %v395_v7 = vld [vmem:[%s520_s0 + $0x18] sm:$0xff]  }
   0x4   :  { %370 = vmatprep.mubr.msk.bf16.mxu0 %vm86_vm0, %v389_v1  ;;  %378 = vmatprep.mubr.msk.bf16.mxu1 %vm86_vm0, %v390_v2  ;;  %v396_v8 = vld [vmem:[%s520_s0 + $0x38] sm:$0xff]   ;;  %v309_v9 = vld [vmem:[%s521_s2] ss:$0 sm:$0xff] }
   0x6   :  { %371 = vmatmul.mubr.msk.bf16.vlgmr.msra.gmra.mrb[0].mxu0 %vm86_vm0, %v391_v3  ;;  %379 = vmatmul.mubr.msk.bf16.vlgmr.msra.gmra.mrb[0].mxu1 %vm86_vm0, %v392_v4 }
   0x7   :  { %374 = vmatprep.mubr.msk.bf16.mxu0 %vm86_vm0, %v393_v5  ;;  %382 = vmatprep.mubr.msk.bf16.mxu1 %vm86_vm0, %v394_v6 }
   0xe   :  { %375 = vmatmul.mubr.msk.bf16.gmra.mrb[4].mxu0 %vm86_vm0, %v395_v7  ;;  %383 = vmatmul.mubr.msk.bf16.gmra.mrb[4].mxu1 %vm86_vm0, %v396_v8 }
  0xd9   :  { %v372_v10 = vpop.f32.mrb[0].mxu0  ;;  %v380_v11 = vpop.f32.mrb[0].mxu1 }
  0xda   :  { %v154_v12 = vadd.f32 %v372_v10, %v309_v9  ;;  %v186_v13 = vadd.f32 %v380_v11, %v309_v9  ;;  %v145_v14 = vpop.f32.mrb[1].mxu0  ;;  %v177_v15 = vpop.f32.mrb[1].mxu1 }
  0xdb   :  { %v146_v16 = vadd.f32 %v309_v9, %v145_v14  ;;  %v178_v17 = vadd.f32 %v309_v9, %v177_v15  ;;  %v373_v18 = vpop.f32.mrb[2].mxu0  ;;  %v381_v19 = vpop.f32.mrb[2].mxu1 }
  0xdc   :  { %v210_v20 = vmax.f32 %v154_v12, 0.0  ;;  %v218_v21 = vmax.f32 %v186_v13, 0.0  ;;  %v157_v22 = vadd.f32 %v373_v18, %v309_v9  ;;  %v189_v23 = vadd.f32 %v381_v19, %v309_v9  ;;  %v148_v24 = vpop.f32.mrb[3].mxu0  ;;  %v180_v25 = vpop.f32.mrb[3].mxu1 }
  0xdd   :  { %v208_v26 = vmax.f32 %v146_v16, 0.0  ;;  %v216_v27 = vmax.f32 %v178_v17, 0.0  ;;  %v149_v28 = vadd.f32 %v309_v9, %v148_v24  ;;  %v181_v29 = vadd.f32 %v309_v9, %v180_v25 }
  0xde   :  { %v345_v30 = vpack.c.bf16 %v210_v20, %v210_v20  ;;  %v353_v31 = vpack.c.bf16 %v218_v21, %v218_v21  ;;  %v211_v32 = vmax.f32 %v157_v22, 0.0  ;;  %v219_v33 = vmax.f32 %v189_v23, 0.0 }
  0xdf   :  { %v343_v34 = vpack.c.bf16 %v208_v26, %v208_v26  ;;  %v351_v35 = vpack.c.bf16 %v216_v27, %v216_v27  ;;  %v209_v36 = vmax.f32 %v149_v28, 0.0  ;;  %v217_v37 = vmax.f32 %v181_v29, 0.0 }
  0xe0   :  { %291 = vst.msk [vmem:[%s522_s3 + $0x8] sm:$0xf] %vm288_vm1, %v345_v30  ;;  %299 = vst.msk [vmem:[%s522_s3 + $0x28] sm:$0xf] %vm288_vm1, %v353_v31  ;;  %v346_v38 = vpack.c.bf16 %v211_v32, %v211_v32  ;;  %v354_v39 = vpack.c.bf16 %v219_v33, %v219_v33 }
  0xe1   :  { %289 = vst.msk [vmem:[%s522_s3] sm:$0xf] %vm288_vm1, %v343_v34  ;;  %297 = vst.msk [vmem:[%s522_s3 + $0x20] sm:$0xf] %vm288_vm1, %v351_v35  ;;  %v344_v40 = vpack.c.bf16 %v209_v36, %v209_v36  ;;  %v352_v41 = vpack.c.bf16 %v217_v37, %v217_v37  ;;  %v376_v42 = vpop.f32.mrb[4].mxu0  ;;  %v384_v43 = vpop.f32.mrb[4].mxu1 }
  0xe2   :  { %292 = vst.msk [vmem:[%s522_s3 + $0xc] sm:$0xf] %vm288_vm1, %v346_v38  ;;  %300 = vst.msk [vmem:[%s522_s3 + $0x2c] sm:$0xf] %vm288_vm1, %v354_v39  ;;  %v170_v44 = vadd.f32 %v376_v42, %v309_v9  ;;  %v202_v45 = vadd.f32 %v384_v43, %v309_v9  ;;  %v161_v46 = vpop.f32.mrb[5].mxu0  ;;  %v193_v47 = vpop.f32.mrb[5].mxu1 }
  0xe3   :  { %290 = vst.msk [vmem:[%s522_s3 + $0x4] sm:$0xf] %vm288_vm1, %v344_v40  ;;  %298 = vst.msk [vmem:[%s522_s3 + $0x24] sm:$0xf] %vm288_vm1, %v352_v41  ;;  %v162_v48 = vadd.f32 %v309_v9, %v161_v46  ;;  %v194_v49 = vadd.f32 %v309_v9, %v193_v47  ;;  %v377_v50 = vpop.f32.mrb[6].mxu0  ;;  %v385_v51 = vpop.f32.mrb[6].mxu1 }
  0xe4   :  { %v214_v52 = vmax.f32 %v170_v44, 0.0  ;;  %v222_v53 = vmax.f32 %v202_v45, 0.0  ;;  %v173_v54 = vadd.f32 %v377_v50, %v309_v9  ;;  %v205_v55 = vadd.f32 %v385_v51, %v309_v9  ;;  %v164_v56 = vpop.f32.mrb[7].mxu0  ;;  %v196_v57 = vpop.f32.mrb[7].mxu1 }
  0xe5   :  { %v212_v58 = vmax.f32 %v162_v48, 0.0  ;;  %v220_v59 = vmax.f32 %v194_v49, 0.0  ;;  %v165_v60 = vadd.f32 %v309_v9, %v164_v56  ;;  %v197_v61 = vadd.f32 %v309_v9, %v196_v57 }
  0xe6   :  { %v349_v62 = vpack.c.bf16 %v214_v52, %v214_v52  ;;  %v357_v63 = vpack.c.bf16 %v222_v53, %v222_v53  ;;  %v215_v0 = vmax.f32 %v173_v54, 0.0  ;;  %v223_v1 = vmax.f32 %v205_v55, 0.0 }
  0xe7   :  { %v347_v2 = vpack.c.bf16 %v212_v58, %v212_v58  ;;  %v355_v3 = vpack.c.bf16 %v220_v59, %v220_v59  ;;  %v213_v4 = vmax.f32 %v165_v60, 0.0  ;;  %v221_v5 = vmax.f32 %v197_v61, 0.0 }
  0xe8   :  { %295 = vst.msk [vmem:[%s522_s3 + $0x18] sm:$0xf] %vm288_vm1, %v349_v62  ;;  %303 = vst.msk [vmem:[%s522_s3 + $0x38] sm:$0xf] %vm288_vm1, %v357_v63  ;;  %v350_v6 = vpack.c.bf16 %v215_v0, %v215_v0  ;;  %v358_v7 = vpack.c.bf16 %v223_v1, %v223_v1 }
  0xe9   :  { %293 = vst.msk [vmem:[%s522_s3 + $0x10] sm:$0xf] %vm288_vm1, %v347_v2  ;;  %301 = vst.msk [vmem:[%s522_s3 + $0x30] sm:$0xf] %vm288_vm1, %v355_v3  ;;  %v348_v8 = vpack.c.bf16 %v213_v4, %v213_v4  ;;  %v356_v9 = vpack.c.bf16 %v221_v5, %v221_v5 }
  0xea   :  { %296 = vst.msk [vmem:[%s522_s3 + $0x1c] sm:$0xf] %vm288_vm1, %v350_v6  ;;  %304 = vst.msk [vmem:[%s522_s3 + $0x3c] sm:$0xf] %vm288_vm1, %v358_v7 }
  0xeb   :  { %294 = vst.msk [vmem:[%s522_s3 + $0x14] sm:$0xf] %vm288_vm1, %v348_v8  ;;  %302 = vst.msk [vmem:[%s522_s3 + $0x34] sm:$0xf] %vm288_vm1, %v356_v9 }

</bundles_post_ra>
